<compile_context>
chip_gen: v6e
topology: v6e:2x2x1
jax: 0.10.0
libtpu: 0.0.40
codegen_flags: <defaults>
</compile_context>

<pallas_src>
import jax
import jax.numpy as jnp
from jax.experimental import pallas as pl
from jax.experimental.pallas import tpu as pltpu

_LANE = 128
_MAX_DMA_CHUNKS = 4  # keep several DMA engines busy on a pure copy


def _chunk_bounds(extent, n_chunks, align=1):
    """Static, contiguous (start, size) chunks covering [0, extent)."""
    n_chunks = max(1, min(n_chunks, extent))
    base = max(1, extent // n_chunks)
    if align > 1:
        base = max(align, (base // align) * align)
    bounds = []
    start = 0
    for i in range(n_chunks):
        if start >= extent:
            break
        if i == n_chunks - 1:
            size = extent - start
        else:
            size = min(base, extent - start)
        bounds.append((start, size))
        start += size
    return bounds


def _make_hbm_copy_kernel(bounds):
    """Kernel: direct HBM->HBM DMA copy, chunked over independent semaphores."""

    def kernel(x_hbm, o_hbm, sems):
        copies = []
        # Issue every chunk's DMA first (they overlap), then wait on all.
        for i, (start, size) in enumerate(bounds):
            cp = pltpu.make_async_copy(
                x_hbm.at[pl.ds(start, size)],
                o_hbm.at[pl.ds(start, size)],
                sems.at[i],
            )
            cp.start()
            copies.append(cp)
        for cp in copies:
            cp.wait()

    return kernel


def _identity_copy(x):
    """Materialized identity copy via direct HBM->HBM DMA (no VMEM staging)."""
    orig_shape = x.shape
    n = int(x.size)
    itemsize = jnp.dtype(x.dtype).itemsize

    if n == 0:
        return x  # nothing to copy

    if n % _LANE == 0:
        # Lane-dense 2-D slab; chunk along rows on packed-sublane boundaries.
        cols = _LANE
        for c in (1024, 512, 256, 128):
            if n % c == 0:
                cols = c
                break
        rows = n // cols
        flat = x.reshape(rows, cols)  # contiguous reshape: no data movement
        flat_shape = (rows, cols)
        sublane = 8 * max(1, 4 // itemsize)  # 8 (f32) / 16 (bf16) / 32 (int8)
        bounds = _chunk_bounds(rows, _MAX_DMA_CHUNKS, align=min(sublane, rows))
    else:
        # Element count not a multiple of 128: chunked 1-D HBM->HBM copy.
        # (Still gridless and VMEM-free, so it is safe for any tensor size.)
        flat = x.reshape(n)
        flat_shape = (n,)
        bounds = _chunk_bounds(n, _MAX_DMA_CHUNKS, align=1)

    out = pl.pallas_call(
        _make_hbm_copy_kernel(bounds),
        out_shape=jax.ShapeDtypeStruct(flat_shape, x.dtype),
        in_specs=[pl.BlockSpec(memory_space=pl.ANY)],
        out_specs=pl.BlockSpec(memory_space=pl.ANY),
        scratch_shapes=[pltpu.SemaphoreType.DMA((len(bounds),))],
        cost_estimate=pl.CostEstimate(
            flops=0, transcendentals=0, bytes_accessed=2 * n * itemsize),
    )(flat)
    return out.reshape(orig_shape)


def mixer_forward(x, *, materialize=False):
    """Mixer.forward: Rearrange('b c h w -> b c h w') (identity).

    Args:
      x: jnp.ndarray of shape (B, C, H, W) (NCHW, matching the PyTorch module).
      materialize: if False (default), return `x` unchanged -- the rearrange is
        a pure identity, so no data movement is needed (recommended production
        path). If True, return a freshly materialized buffer produced by a
        chunked HBM->HBM DMA Pallas kernel.
    Returns:
      jnp.ndarray with the same shape/dtype/values as `x`.
    """
    if not materialize:
        # Identity permutation: elide the kernel entirely (zero HBM traffic).
        return x
    return _identity_copy(x)


if __name__ == "__main__":
    key = jax.random.PRNGKey(0)
    # Small NCHW input consistent with the module's expected 4-D 'b c h w' input.
    x = jax.random.normal(key, (2, 4, 16, 16), dtype=jnp.float32)

    # Default fast path: pure identity, no kernel launch, no copy.
    y_fast = mixer_forward(x)
    assert y_fast is x

    # Explicit materialized path: exercises the HBM->HBM DMA copy kernel.
    y = mixer_forward(x, materialize=True)
    y = jax.block_until_ready(y)

    assert y.shape == x.shape
    assert y.dtype == x.dtype
    assert bool(jnp.array_equal(y, x)), "Mixer (identity rearrange) mismatch"

    print("KERNEL_OK")
</pallas_src>

<mosaic_0001>
module attributes {stable_mosaic.version = 11 : i64} {
  func.func @kernel(%arg0: memref<2x1024xf32, #tpu.memory_space<any>>, %arg1: memref<2x1024xf32, #tpu.memory_space<any>>, %arg2: memref<1x!tpu.dma_semaphore, #tpu.memory_space<semaphore_mem>>) attributes {dimension_semantics = [], scalar_prefetch = 0 : i64, scratch_operands = 1 : i64, tpu.core_type = #tpu.core_type<tc>} {
    %c0_i32 = arith.constant 0 : i32
    %c0_i32_0 = arith.constant 0 : i32
    %c0_i32_1 = arith.constant 0 : i32
    %0 = tpu.memref_slice %arg0[%c0_i32_0, %c0_i32_1] : memref<2x1024xf32, #tpu.memory_space<any>> -> memref<2x1024xf32, #tpu.memory_space<any>>
    %c0_i32_2 = arith.constant 0 : i32
    %c0_i32_3 = arith.constant 0 : i32
    %1 = tpu.memref_slice %arg1[%c0_i32_2, %c0_i32_3] : memref<2x1024xf32, #tpu.memory_space<any>> -> memref<2x1024xf32, #tpu.memory_space<any>>
    %2 = tpu.memref_slice %arg2[%c0_i32] : memref<1x!tpu.dma_semaphore, #tpu.memory_space<semaphore_mem>> -> memref<1x!tpu.dma_semaphore, #tpu.memory_space<semaphore_mem>>
    %3 = tpu.memref_squeeze %2 : memref<1x!tpu.dma_semaphore, #tpu.memory_space<semaphore_mem>> -> memref<!tpu.dma_semaphore, #tpu.memory_space<semaphore_mem>>
    tpu.enqueue_dma source(%0 : memref<2x1024xf32, #tpu.memory_space<any>>) target(%1 : memref<2x1024xf32, #tpu.memory_space<any>>) target_semaphore(%3 : memref<!tpu.dma_semaphore, #tpu.memory_space<semaphore_mem>>)
    %c0_i32_4 = arith.constant 0 : i32
    %c0_i32_5 = arith.constant 0 : i32
    %c0_i32_6 = arith.constant 0 : i32
    %4 = tpu.memref_slice %arg0[%c0_i32_5, %c0_i32_6] : memref<2x1024xf32, #tpu.memory_space<any>> -> memref<2x1024xf32, #tpu.memory_space<any>>
    %c0_i32_7 = arith.constant 0 : i32
    %c0_i32_8 = arith.constant 0 : i32
    %5 = tpu.memref_slice %arg1[%c0_i32_7, %c0_i32_8] : memref<2x1024xf32, #tpu.memory_space<any>> -> memref<2x1024xf32, #tpu.memory_space<any>>
    %6 = tpu.memref_slice %arg2[%c0_i32_4] : memref<1x!tpu.dma_semaphore, #tpu.memory_space<semaphore_mem>> -> memref<1x!tpu.dma_semaphore, #tpu.memory_space<semaphore_mem>>
    %7 = tpu.memref_squeeze %6 : memref<1x!tpu.dma_semaphore, #tpu.memory_space<semaphore_mem>> -> memref<!tpu.dma_semaphore, #tpu.memory_space<semaphore_mem>>
    tpu.wait_dma2 semaphore(%7 : memref<!tpu.dma_semaphore, #tpu.memory_space<semaphore_mem>>) src(%4 : memref<2x1024xf32, #tpu.memory_space<any>>) dst(%5 : memref<2x1024xf32, #tpu.memory_space<any>>)
    return
  }
}

</mosaic_0001>

<bundles_post_ra>
// kernel: tpu_custom_call.1
= control target key start
LH: loop header
LB: loop body
LE: loop exit
PB: predicated region body
PF: predicated region fallthrough
CT: control target
= control target key end

     0   :  { %s29_s6 = smov [#allocation2]   ;;  %s30_s7 = smov 131072   ;;  %s48_s0 = inlined_call_operand.hbm [shape: f32[2,1024], index: 0, kind: input, shape index: {}]   ;;  %s49_s1 = inlined_call_operand.hbm [shape: f32[2,1024], index: 1, kind: output, shape index: {}]  }
   0x1   :  { %s31_s8 = smov 0  }
   0x2   :  { %12 = dma.general %s48_s0, 256, %s49_s1, %s29_s6, %s30_s7, [#allocation4], %s31_s8, 0  }
   0x3   :  { %27 = dma.done.wait [#allocation2], 256 }
   0x4   :  { %28 = vsyncadd [#allocation2], 4294967040 }
   0x5   :  { %17 = vsyncmov [#allocation2] }
   0x8   :  { %s18_s13 = vpop.sfrf %17 }
   0x9   :  { %p23_p0 = scmp.ne.s32.totalorder %s18_s13, 0 }
   0xb   :  { %22 = shalt.err (%p23_p0)  }

</bundles_post_ra>
